<compile_context>
chip_gen: v5e
topology: v5e:2x2
jax: 0.10.0
libtpu: 0.0.40
codegen_flags: <defaults>
</compile_context>

<pallas_src>
import functools

import numpy as np
import jax
import jax.numpy as jnp
from jax import lax
from jax.experimental import pallas as pl
from jax.experimental.pallas import tpu as pltpu

S1_DIM, S2_DIM, A_DIM = 8, 128, 64
IN_DIM = S1_DIM + S2_DIM            # 136
IMG = 10                            # conv "image" is 10x10 -> 100 flat features


# --------------------------------------------------------------------------- #
# Kernel: 5 lane-dense MXU matmuls + VPU bias/ReLU/tanh epilogues.
# --------------------------------------------------------------------------- #
def actor_kernel(x_ref, ws_ref, bs_ref, t1_ref, bc1_ref, t2_ref, bc2_ref,
                 w3a_ref, w3b_ref, b3_ref, out_ref, *, compute_dtype):
    f32 = jnp.float32
    dot = lambda a, b: jnp.dot(a.astype(compute_dtype), b,
                               preferred_element_type=f32)

    # Stage 1 (block-diagonal [w2 | folded w1]) + ReLU  -> [h2 | s1net] (TB,128)
    h = jnp.maximum(dot(x_ref[...], ws_ref[...]) + bs_ref[...], 0.0)

    # conv1 (7x7 pad 3) as matmul against zero-padded (128,100) matrix + ReLU
    c1 = jnp.maximum(dot(h, t1_ref[...]) + bc1_ref[...], 0.0)
    # conv2 (5x5 pad 2) as matmul + ReLU  -> s2net (TB,100)
    s2net = jnp.maximum(dot(c1, t2_ref[...]) + bc2_ref[...], 0.0)

    # combine Linear(128->64): s1net part via zero-padded w3[:28], s2net part
    # via w3[28:] — no in-kernel concat or lane slicing — then tanh.
    out = dot(h, w3a_ref[...]) + dot(s2net, w3b_ref[...]) + b3_ref[...]
    out_ref[...] = jnp.tanh(out)                                  # (TB, 64)


# --------------------------------------------------------------------------- #
# Wrapper glue (pure weight layout, no activation compute)
# --------------------------------------------------------------------------- #
@functools.lru_cache(maxsize=None)
def _conv_scatter_mask(k, pad, h=IMG, w=IMG):
    """Static 0/1 mask M[in_flat, out_flat, di*k+dj] encoding nn.Conv2d
    (cross-correlation, stride 1, zero padding `pad`) on an h x w image."""
    m = np.zeros((h * w, h * w, k * k), np.float32)
    for i in range(h):
        for j in range(w):
            o = i * w + j
            for di in range(k):
                for dj in range(k):
                    r, c = i + di - pad, j + dj - pad
                    if 0 <= r < h and 0 <= c < w:
                        m[r * w + c, o, di * k + dj] = 1.0
    return m


def conv_as_matrix(w_kk, pad):
    """(k,k) conv weight -> (100,100) matrix T with out_flat = in_flat @ T."""
    k = w_kk.shape[0]
    mask = jnp.asarray(_conv_scatter_mask(k, pad))           # (100,100,k*k), static
    return jnp.sum(mask * w_kk.reshape(1, 1, -1), axis=-1)   # exact scatter


def actor_forward(x, p, *, max_batch_tile=2048, compute_dtype=jnp.bfloat16):
    B = x.shape[0]
    f32 = jnp.float32
    cdt = compute_dtype

    # Batch tile: multiple of 8 sublanes; cap so large batches give >= 2 grid
    # steps (v7x: lets the two TensorCores split the parallel axis); pad ragged
    # batches with zero rows (harmless garbage rows, sliced off after the call).
    half = pl.cdiv(pl.cdiv(B, 2), 8) * 8
    TB = max(8, min(max_batch_tile, half))
    Bp = pl.cdiv(B, TB) * TB
    xp = x.astype(cdt)
    if Bp != B:
        xp = jnp.pad(xp, ((0, Bp - B), (0, 0)))

    # ---- weight packing (built once per call; differentiable w.r.t. params) --
    # Fold the two s1 linears (no nonlinearity between them).
    W1 = p["w1a"] @ p["w1b"]                                  # (8, 28)
    b1 = p["b1a"] @ p["w1b"] + p["b1b"]                       # (1, 28)

    # Block-diagonal first stage: ReLU(x @ Ws + bs) = [h2 | s1net].
    Ws = jnp.zeros((IN_DIM, 128), f32)
    Ws = Ws.at[S1_DIM:, :100].set(p["w2"])
    Ws = Ws.at[:S1_DIM, 100:].set(W1)
    bs = jnp.concatenate([p["b2"].reshape(1, 100), b1], axis=1)   # (1, 128)

    # Convs as matmuls; t1 zero-padded so it consumes only the h2 lanes.
    t1 = conv_as_matrix(p["wc1"], 3)                          # 7x7, pad=3
    t2 = conv_as_matrix(p["wc2"], 2)                          # 5x5, pad=2
    t1_pad = jnp.zeros((128, 100), f32).at[:100].set(t1)
    bc1 = jnp.broadcast_to(p["bc1"].reshape(1, 1), (1, 100))
    bc2 = jnp.broadcast_to(p["bc2"].reshape(1, 1), (1, 100))

    # Final combine, split + zero-padded: no in-kernel concat / lane slicing.
    w3a_pad = jnp.zeros((128, A_DIM), f32).at[100:].set(p["w3"][:28])
    w3b = p["w3"][28:]                                        # (100, 64)

    weights = (Ws.astype(cdt), bs, t1_pad.astype(cdt), bc1,
               t2.astype(cdt), bc2, w3a_pad.astype(cdt),
               w3b.astype(cdt), p["b3"])

    batch_spec = lambda f: pl.BlockSpec((TB, f), lambda i: (i, 0))
    full_spec = lambda a: pl.BlockSpec(a.shape, lambda i: (0,) * a.ndim)

    out = pl.pallas_call(
        functools.partial(actor_kernel, compute_dtype=cdt),
        out_shape=jax.ShapeDtypeStruct((Bp, A_DIM), jnp.float32),
        grid=(Bp // TB,),
        in_specs=[batch_spec(IN_DIM)] + [full_spec(w) for w in weights],
        out_specs=batch_spec(A_DIM),
        compiler_params=pltpu.CompilerParams(
            dimension_semantics=("parallel",)),
    )(xp, *weights)

    return out[:B]


# --------------------------------------------------------------------------- #
# Pure-JAX reference matching the PyTorch forward exactly (f32)
# --------------------------------------------------------------------------- #
def reference_forward(x, p):
    s1, s2 = x[:, :S1_DIM], x[:, S1_DIM:]
    s1net = (s1 @ p["w1a"] + p["b1a"]) @ p["w1b"] + p["b1b"]
    s1net = jnp.maximum(s1net, 0.0)
    h2 = jnp.maximum(s2 @ p["w2"] + p["b2"], 0.0)
    img = h2.reshape(-1, 1, IMG, IMG)
    c1 = lax.conv_general_dilated(img, p["wc1"].reshape(1, 1, 7, 7),
                                  (1, 1), [(3, 3), (3, 3)]) + p["bc1"]
    c1 = jnp.maximum(c1, 0.0)
    c2 = lax.conv_general_dilated(c1, p["wc2"].reshape(1, 1, 5, 5),
                                  (1, 1), [(2, 2), (2, 2)]) + p["bc2"]
    c2 = jnp.maximum(c2, 0.0)
    s2net = c2.reshape(-1, 100)
    return jnp.tanh(jnp.concatenate([s1net, s2net], axis=1) @ p["w3"] + p["b3"])


def init_params(key):
    ks = jax.random.split(key, 12)

    def uni(k, shape, fan_in):
        b = 1.0 / np.sqrt(fan_in)
        return jax.random.uniform(k, shape, jnp.float32, -b, b)

    return {
        "w1a": uni(ks[0], (8, 28), 8),      "b1a": uni(ks[1], (1, 28), 8),
        "w1b": uni(ks[2], (28, 28), 28),    "b1b": uni(ks[3], (1, 28), 28),
        "w2":  uni(ks[4], (128, 100), 128), "b2":  uni(ks[5], (100,), 128),
        "wc1": uni(ks[6], (7, 7), 49),      "bc1": uni(ks[7], (1,), 49),
        "wc2": uni(ks[8], (5, 5), 25),      "bc2": uni(ks[9], (1,), 25),
        "w3":  uni(ks[10], (128, 64), 128), "b3":  uni(ks[11], (1, 64), 128),
    }


if __name__ == "__main__":
    key = jax.random.PRNGKey(0)
    k_param, k_x = jax.random.split(key)
    params = init_params(k_param)

    # Tolerance note: the kernel runs bf16 operands with f32 accumulation
    # (and the convs re-associated onto the MXU as matmuls), while the
    # reference is pure-f32 XLA.  Expected deviation is ~1e-3..1e-2 on
    # values of magnitude <= 1 (tanh output); a structural bug would show
    # errors of order 0.1-1, so 2e-2 still discriminates cleanly.
    for batch in (2, 300):   # small case + ragged multi-tile case (exercises the grid)
        x = jax.random.normal(jax.random.fold_in(k_x, batch),
                              (batch, IN_DIM), jnp.float32)

        out = jax.block_until_ready(actor_forward(x, params))
        ref = jax.block_until_ready(reference_forward(x, params))

        assert out.shape == (batch, A_DIM)
        np.testing.assert_allclose(np.asarray(out), np.asarray(ref),
                                   rtol=2e-2, atol=2e-2)

    print("KERNEL_OK")
</pallas_src>

<mosaic_0001>
module attributes {stable_mosaic.version = 11 : i64} {
  func.func @actor_kernel(%arg0: i32, %arg1: memref<8x136xbf16, #tpu.memory_space<vmem>>, %arg2: memref<136x128xbf16, #tpu.memory_space<vmem>>, %arg3: memref<1x128xf32, #tpu.memory_space<vmem>>, %arg4: memref<128x100xbf16, #tpu.memory_space<vmem>>, %arg5: memref<1x100xf32, #tpu.memory_space<vmem>>, %arg6: memref<100x100xbf16, #tpu.memory_space<vmem>>, %arg7: memref<1x100xf32, #tpu.memory_space<vmem>>, %arg8: memref<128x64xbf16, #tpu.memory_space<vmem>>, %arg9: memref<100x64xbf16, #tpu.memory_space<vmem>>, %arg10: memref<1x64xf32, #tpu.memory_space<vmem>>, %arg11: memref<8x64xf32, #tpu.memory_space<vmem>>) attributes {dimension_semantics = [#tpu.dimension_semantics<parallel>], iteration_bounds = array<i64: 1>, scalar_prefetch = 0 : i64, scratch_operands = 0 : i64, tpu.core_type = #tpu.core_type<tc>, window_params = [{transform_indices = @transform_0, window_bounds = array<i64: 8, 136>}, {pipeline_mode = #tpu.pipeline_mode<synchronous>, transform_indices = @transform_1, window_bounds = array<i64: 136, 128>}, {pipeline_mode = #tpu.pipeline_mode<synchronous>, transform_indices = @transform_2, window_bounds = array<i64: 1, 128>}, {pipeline_mode = #tpu.pipeline_mode<synchronous>, transform_indices = @transform_3, window_bounds = array<i64: 128, 100>}, {pipeline_mode = #tpu.pipeline_mode<synchronous>, transform_indices = @transform_4, window_bounds = array<i64: 1, 100>}, {pipeline_mode = #tpu.pipeline_mode<synchronous>, transform_indices = @transform_5, window_bounds = array<i64: 100, 100>}, {pipeline_mode = #tpu.pipeline_mode<synchronous>, transform_indices = @transform_6, window_bounds = array<i64: 1, 100>}, {pipeline_mode = #tpu.pipeline_mode<synchronous>, transform_indices = @transform_7, window_bounds = array<i64: 128, 64>}, {pipeline_mode = #tpu.pipeline_mode<synchronous>, transform_indices = @transform_8, window_bounds = array<i64: 100, 64>}, {pipeline_mode = #tpu.pipeline_mode<synchronous>, transform_indices = @transform_9, window_bounds = array<i64: 1, 64>}, {transform_indices = @transform_10, window_bounds = array<i64: 8, 64>}]} {
    %c0 = arith.constant 0 : index
    %c0_0 = arith.constant 0 : index
    %0 = vector.load %arg1[%c0, %c0_0] : memref<8x136xbf16, #tpu.memory_space<vmem>>, vector<8x136xbf16>
    %c0_1 = arith.constant 0 : index
    %c0_2 = arith.constant 0 : index
    %1 = vector.load %arg2[%c0_1, %c0_2] : memref<136x128xbf16, #tpu.memory_space<vmem>>, vector<136x128xbf16>
    %cst = arith.constant dense<0.000000e+00> : vector<8x128xf32>
    %2 = tpu.matmul %0, %1, %cst {dimension_numbers = #tpu.dot_dimension_numbers<[1], [0], [0], [1], [0, 0, 1, 1], [], []>} : vector<8x136xbf16>, vector<136x128xbf16>, vector<8x128xf32> -> vector<8x128xf32>
    %c0_3 = arith.constant 0 : index
    %c0_4 = arith.constant 0 : index
    %3 = vector.load %arg3[%c0_3, %c0_4] : memref<1x128xf32, #tpu.memory_space<vmem>>, vector<1x128xf32>
    %4 = vector.broadcast %3 : vector<1x128xf32> to vector<8x128xf32>
    %5 = arith.addf %2, %4 : vector<8x128xf32>
    %cst_5 = arith.constant 0.000000e+00 : f32
    %6 = vector.broadcast %cst_5 : f32 to vector<8x128xf32>
    %7 = arith.maximumf %5, %6 : vector<8x128xf32>
    %c0_6 = arith.constant 0 : index
    %c0_7 = arith.constant 0 : index
    %8 = vector.load %arg4[%c0_6, %c0_7] : memref<128x100xbf16, #tpu.memory_space<vmem>>, vector<128x100xbf16>
    %9 = arith.truncf %7 : vector<8x128xf32> to vector<8x128xbf16>
    %cst_8 = arith.constant dense<0.000000e+00> : vector<8x100xf32>
    %10 = tpu.matmul %9, %8, %cst_8 {dimension_numbers = #tpu.dot_dimension_numbers<[1], [0], [0], [1], [0, 0, 1, 1], [], []>} : vector<8x128xbf16>, vector<128x100xbf16>, vector<8x100xf32> -> vector<8x100xf32>
    %c0_9 = arith.constant 0 : index
    %c0_10 = arith.constant 0 : index
    %11 = vector.load %arg5[%c0_9, %c0_10] : memref<1x100xf32, #tpu.memory_space<vmem>>, vector<1x100xf32>
    %12 = vector.broadcast %11 : vector<1x100xf32> to vector<8x100xf32>
    %13 = arith.addf %10, %12 : vector<8x100xf32>
    %cst_11 = arith.constant 0.000000e+00 : f32
    %14 = vector.broadcast %cst_11 : f32 to vector<8x100xf32>
    %15 = arith.maximumf %13, %14 : vector<8x100xf32>
    %c0_12 = arith.constant 0 : index
    %c0_13 = arith.constant 0 : index
    %16 = vector.load %arg6[%c0_12, %c0_13] : memref<100x100xbf16, #tpu.memory_space<vmem>>, vector<100x100xbf16>
    %17 = arith.truncf %15 : vector<8x100xf32> to vector<8x100xbf16>
    %cst_14 = arith.constant dense<0.000000e+00> : vector<8x100xf32>
    %18 = tpu.matmul %17, %16, %cst_14 {dimension_numbers = #tpu.dot_dimension_numbers<[1], [0], [0], [1], [0, 0, 1, 1], [], []>} : vector<8x100xbf16>, vector<100x100xbf16>, vector<8x100xf32> -> vector<8x100xf32>
    %c0_15 = arith.constant 0 : index
    %c0_16 = arith.constant 0 : index
    %19 = vector.load %arg7[%c0_15, %c0_16] : memref<1x100xf32, #tpu.memory_space<vmem>>, vector<1x100xf32>
    %20 = vector.broadcast %19 : vector<1x100xf32> to vector<8x100xf32>
    %21 = arith.addf %18, %20 : vector<8x100xf32>
    %cst_17 = arith.constant 0.000000e+00 : f32
    %22 = vector.broadcast %cst_17 : f32 to vector<8x100xf32>
    %23 = arith.maximumf %21, %22 : vector<8x100xf32>
    %c0_18 = arith.constant 0 : index
    %c0_19 = arith.constant 0 : index
    %24 = vector.load %arg8[%c0_18, %c0_19] : memref<128x64xbf16, #tpu.memory_space<vmem>>, vector<128x64xbf16>
    %25 = arith.truncf %7 : vector<8x128xf32> to vector<8x128xbf16>
    %cst_20 = arith.constant dense<0.000000e+00> : vector<8x64xf32>
    %26 = tpu.matmul %25, %24, %cst_20 {dimension_numbers = #tpu.dot_dimension_numbers<[1], [0], [0], [1], [0, 0, 1, 1], [], []>} : vector<8x128xbf16>, vector<128x64xbf16>, vector<8x64xf32> -> vector<8x64xf32>
    %c0_21 = arith.constant 0 : index
    %c0_22 = arith.constant 0 : index
    %27 = vector.load %arg9[%c0_21, %c0_22] : memref<100x64xbf16, #tpu.memory_space<vmem>>, vector<100x64xbf16>
    %28 = arith.truncf %23 : vector<8x100xf32> to vector<8x100xbf16>
    %cst_23 = arith.constant dense<0.000000e+00> : vector<8x64xf32>
    %29 = tpu.matmul %28, %27, %cst_23 {dimension_numbers = #tpu.dot_dimension_numbers<[1], [0], [0], [1], [0, 0, 1, 1], [], []>} : vector<8x100xbf16>, vector<100x64xbf16>, vector<8x64xf32> -> vector<8x64xf32>
    %30 = arith.addf %26, %29 : vector<8x64xf32>
    %c0_24 = arith.constant 0 : index
    %c0_25 = arith.constant 0 : index
    %31 = vector.load %arg10[%c0_24, %c0_25] : memref<1x64xf32, #tpu.memory_space<vmem>>, vector<1x64xf32>
    %32 = vector.broadcast %31 : vector<1x64xf32> to vector<8x64xf32>
    %33 = arith.addf %30, %32 : vector<8x64xf32>
    %34 = math.tanh %33 : vector<8x64xf32>
    %c0_26 = arith.constant 0 : index
    %c0_27 = arith.constant 0 : index
    %35 = vector.load %arg11[%c0_26, %c0_27] : memref<8x64xf32, #tpu.memory_space<vmem>>, vector<8x64xf32>
    tpu.vector_store %arg11[%c0_26, %c0_27], %34 {strides = array<i32>} : memref<8x64xf32, #tpu.memory_space<vmem>>, vector<8x64xf32>,
    return
  }
  func.func @transform_0(%arg0: i32) -> (i32, i32) {
    %c0_i32 = arith.constant 0 : i32
    %c0_i32_0 = arith.constant 0 : i32
    return %arg0, %c0_i32 : i32, i32
  }
  func.func @transform_1(%arg0: i32) -> (i32, i32) {
    %c0_i32 = arith.constant 0 : i32
    %c0_i32_0 = arith.constant 0 : i32
    %c0_i32_1 = arith.constant 0 : i32
    return %c0_i32, %c0_i32_0 : i32, i32
  }
  func.func @transform_2(%arg0: i32) -> (i32, i32) {
    %c0_i32 = arith.constant 0 : i32
    %c0_i32_0 = arith.constant 0 : i32
    %c0_i32_1 = arith.constant 0 : i32
    return %c0_i32, %c0_i32_0 : i32, i32
  }
  func.func @transform_3(%arg0: i32) -> (i32, i32) {
    %c0_i32 = arith.constant 0 : i32
    %c0_i32_0 = arith.constant 0 : i32
    %c0_i32_1 = arith.constant 0 : i32
    return %c0_i32, %c0_i32_0 : i32, i32
  }
  func.func @transform_4(%arg0: i32) -> (i32, i32) {
    %c0_i32 = arith.constant 0 : i32
    %c0_i32_0 = arith.constant 0 : i32
    %c0_i32_1 = arith.constant 0 : i32
    return %c0_i32, %c0_i32_0 : i32, i32
  }
  func.func @transform_5(%arg0: i32) -> (i32, i32) {
    %c0_i32 = arith.constant 0 : i32
    %c0_i32_0 = arith.constant 0 : i32
    %c0_i32_1 = arith.constant 0 : i32
    return %c0_i32, %c0_i32_0 : i32, i32
  }
  func.func @transform_6(%arg0: i32) -> (i32, i32) {
    %c0_i32 = arith.constant 0 : i32
    %c0_i32_0 = arith.constant 0 : i32
    %c0_i32_1 = arith.constant 0 : i32
    return %c0_i32, %c0_i32_0 : i32, i32
  }
  func.func @transform_7(%arg0: i32) -> (i32, i32) {
    %c0_i32 = arith.constant 0 : i32
    %c0_i32_0 = arith.constant 0 : i32
    %c0_i32_1 = arith.constant 0 : i32
    return %c0_i32, %c0_i32_0 : i32, i32
  }
  func.func @transform_8(%arg0: i32) -> (i32, i32) {
    %c0_i32 = arith.constant 0 : i32
    %c0_i32_0 = arith.constant 0 : i32
    %c0_i32_1 = arith.constant 0 : i32
    return %c0_i32, %c0_i32_0 : i32, i32
  }
  func.func @transform_9(%arg0: i32) -> (i32, i32) {
    %c0_i32 = arith.constant 0 : i32
    %c0_i32_0 = arith.constant 0 : i32
    %c0_i32_1 = arith.constant 0 : i32
    return %c0_i32, %c0_i32_0 : i32, i32
  }
  func.func @transform_10(%arg0: i32) -> (i32, i32) {
    %c0_i32 = arith.constant 0 : i32
    %c0_i32_0 = arith.constant 0 : i32
    return %arg0, %c0_i32 : i32, i32
  }
}

</mosaic_0001>

<bundles_post_ra>
// kernel: tpu_custom_call.1
= control target key start
LH: loop header
LB: loop body
LE: loop exit
PB: predicated region body
PF: predicated region fallthrough
CT: control target
= control target key end

     0   :  { %vm120_vm0 = vcmask 1043456   ;;  %s897_s0 = inlined_call_operand.vmem [shape: bf16[8,136], index: 0, kind: input, shape index: {}]   ;;  %s898_s1 = inlined_call_operand.vmem [shape: bf16[136,128], index: 1, kind: input, shape index: {}]   ;;  %s899_s2 = inlined_call_operand.vmem [shape: f32[1,128], index: 2, kind: input, shape index: {}]   ;;  %s900_s3 = inlined_call_operand.vmem [shape: bf16[128,100], index: 3, kind: input, shape index: {}]   ;;  %s901_s4 = inlined_call_operand.vmem [shape: f32[1,100], index: 4, kind: input, shape index: {}]   ;;  %s902_s5 = inlined_call_operand.vmem [shape: bf16[100,100], index: 5, kind: input, shape index: {}]   ;;  %s903_s6 = inlined_call_operand.vmem [shape: f32[1,100], index: 6, kind: input, shape index: {}]   ;;  %s904_s7 = inlined_call_operand.vmem [shape: bf16[128,64], index: 7, kind: input, shape index: {}]   ;;  %s905_s8 = inlined_call_operand.vmem [shape: bf16[100,64], index: 8, kind: input, shape index: {}]   ;;  %s906_s9 = inlined_call_operand.vmem [shape: f32[1,64], index: 9, kind: input, shape index: {}]   ;;  %s907_s10 = inlined_call_operand.hbm [shape: f32[8,64], index: 10, kind: output, shape index: {}]  }
   0x1   :  { %v640_v0 = vld [vmem:[%s898_s1 + $0x38] sm:$0xff]  ;;  %v639_v1 = vld [vmem:[%s898_s1 + $0x30] sm:$0xff]  ;;  %v54_v2 = vld [vmem:[%s898_s1 + $0x40] sm:$0xf] }
   0x2   :  { %124 = vmatpush.bf16.msra.mxu0 %v640_v0  ;;  %v37_v3 = vld [vmem:[%s897_s0] sm:$0xff]  ;;  %v98_v4 = vunpack.c.l.b16 %v54_v2  ;;  %v648_v6 = vld [vmem:[%s900_s3 + $0x38] sm:$0xff]  ;;  %v647_v7 = vld [vmem:[%s900_s3 + $0x30] sm:$0xff] }
   0x3   :  { %v61_v5 = vunpack.c.h.b16 %v37_v3  ;;  %220 = vmatpush.bf16.msra.mxu2 %v648_v6  ;;  %v638_v9 = vld [vmem:[%s898_s1 + $0x28] sm:$0xff] }
   0x4   :  { %v107_v8 = vpack.c.b16 %v98_v4, %v98_v4 }
   0x6   :  { %125 = vmatpush.bf16.msra.mxu0 %v639_v1 }
   0x7   :  { %15 = vsyncpa [#allocation3], 0  ;;  %v122_v10 = vsel %vm120_vm0, %v107_v8, 0  ;;  %v63_v11 = vpack.c.b16 %v61_v5, %v61_v5  ;;  %vm116_vm1 = vcmask 64512   ;;  %221 = vmatpush.bf16.msra.mxu2 %v647_v7  ;;  %v646_v12 = vld [vmem:[%s900_s3 + $0x28] sm:$0xff]  ;;  %v637_v13 = vld [vmem:[%s898_s1 + $0x20] sm:$0xff]  ;;  %v60_v18 = vunpack.c.l.b16 %v37_v3 }
   0x8   :  { %144 = vmatpush.bf16.msra.mxu1 %v122_v10  ;;  %v645_v14 = vld [vmem:[%s900_s3 + $0x20] sm:$0xff]  ;;  %v636_v15 = vld [vmem:[%s898_s1 + $0x18] sm:$0xff]  ;;  %v635_v16 = vld [vmem:[%s898_s1 + $0x10] sm:$0xff]  ;;  %vm295_vm2 = vcmask 1041408   ;;  %vm291_vm3 = vcmask 818176   ;;  %s477_s28 = sshll.u32 %s907_s10, 4  ;;  %s478_s28 = int_to_ptr.hbm [resolvable:$true] %s477_s28 }
   0x9   :  { %v634_v17 = vld [vmem:[%s898_s1 + $0x8] sm:$0xff]  ;;  %v633_v19 = vld [vmem:[%s898_s1] sm:$0xff]  ;;  %v62_v20 = vpack.c.b16 %v60_v18, %v60_v18  ;;  %v644_v21 = vld [vmem:[%s900_s3 + $0x18] sm:$0xff]  ;;  %vm468_vm4 = vcmask 523264  }
   0xa   :  { %126 = vmatpush.bf16.msra.mxu0 %v638_v9  ;;  %v643_v22 = vld [vmem:[%s900_s3 + $0x10] sm:$0xff]  ;;  %v642_v23 = vld [vmem:[%s900_s3 + $0x8] sm:$0xff]  ;;  %v641_v24 = vld [vmem:[%s900_s3] sm:$0xff] }
   0xb   :  { %518 = vmatmul.msk.bf16.vlgmr.msra.gmra.mxu1 %vm116_vm1, %v63_v11  ;;  %222 = vmatpush.bf16.msra.mxu2 %v646_v12  ;;  %v246_v25 = vld [vmem:[%s902_s5 + $0x30] sm:$0x3]  ;;  %v654_v30 = vld [vmem:[%s902_s5 + $0x28] sm:$0xff]  ;;  %v653_v32 = vld [vmem:[%s902_s5 + $0x20] sm:$0xff] }
   0xc   :  { %v277_v27 = vunpack.c.l.b16 %v246_v25  ;;  %v652_v33 = vld [vmem:[%s902_s5 + $0x18] sm:$0xff]  ;;  %v651_v34 = vld [vmem:[%s902_s5 + $0x10] sm:$0xff]  ;;  %v670_v35 = vld [vmem:[%s899_s2] ss:$0 sm:$0xff] }
   0xd   :  { %v650_v36 = vld [vmem:[%s902_s5 + $0x8] sm:$0xff]  ;;  %v649_v40 = vld [vmem:[%s902_s5] sm:$0xff]  ;;  %v662_v41 = vld [vmem:[%s904_s7 + $0x38] sm:$0xff] }
   0xe   :  { %127 = vmatpush.bf16.msra.mxu0 %v637_v13  ;;  %v284_v28 = vpack.c.b16 %v277_v27, %v277_v27  ;;  %v661_v45 = vld [vmem:[%s904_s7 + $0x30] sm:$0xff]  ;;  %v660_v46 = vld [vmem:[%s904_s7 + $0x28] sm:$0xff]  ;;  %v659_v47 = vld [vmem:[%s904_s7 + $0x20] sm:$0xff] }
   0xf   :  { %223 = vmatpush.bf16.msra.mxu2 %v645_v14  ;;  %v658_v48 = vld [vmem:[%s904_s7 + $0x18] sm:$0xff]  ;;  %v657_v49 = vld [vmem:[%s904_s7 + $0x10] sm:$0xff]  ;;  %v656_v50 = vld [vmem:[%s904_s7 + $0x8] sm:$0xff] }
  0x10   :  { %v297_v29 = vsel %vm295_vm2, %v284_v28, 0  ;;  %v655_v51 = vld [vmem:[%s904_s7] sm:$0xff]  ;;  %v341_v52 = vld [vmem:[%s905_s8 + $0x30] sm:$0x3]  ;;  %v668_v57 = vld [vmem:[%s905_s8 + $0x28] sm:$0xff] }
  0x11   :  { %300 = vmatpush.bf16.msra.mxu3 %v297_v29  ;;  %v368_v53 = vunpack.c.l.b16 %v341_v52  ;;  %v671_v56 = vld [vmem:[%s901_s4] ss:$0 sm:$0xff]  ;;  %v666_v63 = vld [vmem:[%s905_s8 + $0x18] sm:$0xff]  ;;  %v665_v1 = vld [vmem:[%s905_s8 + $0x10] sm:$0xff] }
  0x12   :  { %128 = vmatpush.bf16.msra.mxu0 %v636_v15  ;;  %v667_v60 = vld [vmem:[%s905_s8 + $0x20] sm:$0xff]  ;;  %v664_v2 = vld [vmem:[%s905_s8 + $0x8] sm:$0xff] }
  0x13   :  { %224 = vmatpush.bf16.msra.mxu2 %v644_v21  ;;  %v375_v54 = vpack.c.b16 %v368_v53, %v368_v53  ;;  %v663_v3 = vld [vmem:[%s905_s8] sm:$0xff]  ;;  %s702_s8 = smov [#allocation2]  }
  0x14   :  { %v672_v4 = vld [vmem:[%s903_s6] ss:$0 sm:$0xff]  ;;  %s475_s0 = sshll.u32 %s702_s8, 4  ;;  %s476_s0 = int_to_ptr.vmem [resolvable:$true] %s475_s0 }
  0x15   :  { %301 = vmatpush.bf16.msra.mxu3 %v654_v30  ;;  %v386_v55 = vsel %vm295_vm2, %v375_v54, 0  ;;  %v673_v12 = vld [vmem:[%s906_s9] ss:$0 sm:$0xff] }
  0x16   :  { %129 = vmatpush.bf16.msra.mxu0 %v635_v16  ;;  %389 = vmatpush.bf16.msrb.mxu1 %v386_v55 }
  0x17   :  { %225 = vmatpush.bf16.msra.mxu2 %v643_v22 }
  0x19   :  { %302 = vmatpush.bf16.msra.mxu3 %v653_v32 }
  0x1a   :  { %130 = vmatpush.bf16.msra.mxu0 %v634_v17  ;;  %390 = vmatpush.bf16.msrb.mxu1 %v668_v57 }
  0x1b   :  { %226 = vmatpush.bf16.msra.mxu2 %v642_v23 }
  0x1d   :  { %303 = vmatpush.bf16.msra.mxu3 %v652_v33 }
  0x1e   :  { %131 = vmatpush.bf16.msra.mxu0 %v633_v19  ;;  %391 = vmatpush.bf16.msrb.mxu1 %v667_v60 }
  0x1f   :  { %227 = vmatpush.bf16.msra.mxu2 %v641_v24 }
  0x21   :  { %132 = vmatmul.bf16.vlgmr.msra.gmra.mxu0 %v62_v20  ;;  %304 = vmatpush.bf16.msra.mxu3 %v651_v34 }
  0x22   :  { %392 = vmatpush.bf16.msrb.mxu1 %v666_v63 }
  0x25   :  { %305 = vmatpush.bf16.msra.mxu3 %v650_v36 }
  0x26   :  { %393 = vmatpush.bf16.msrb.mxu1 %v665_v1 }
  0x29   :  { %306 = vmatpush.bf16.msra.mxu3 %v649_v40 }
  0x2a   :  { %394 = vmatpush.bf16.msrb.mxu1 %v664_v2 }
  0x2d   :  { %449 = vmatpush.bf16.msrb.mxu3 %v662_v41 }
  0x2e   :  { %395 = vmatpush.bf16.msrb.mxu1 %v663_v3 }
  0x31   :  { %450 = vmatpush.bf16.msrb.mxu3 %v661_v45 }
  0x35   :  { %451 = vmatpush.bf16.msrb.mxu3 %v660_v46 }
  0x39   :  { %452 = vmatpush.bf16.msrb.mxu3 %v659_v47 }
  0x3d   :  { %453 = vmatpush.bf16.msrb.mxu3 %v658_v48 }
  0x41   :  { %454 = vmatpush.bf16.msrb.mxu3 %v657_v49 }
  0x45   :  { %455 = vmatpush.bf16.msrb.mxu3 %v656_v50 }
  0x49   :  { %456 = vmatpush.bf16.msrb.mxu3 %v655_v51 }
  0x88   :  { %v146_v26 = vpop.f32.mrf.mxu1 }
  0x90   :  { %v148_v31 = vpop.f32.mrf.mxu1 }
  0x9e   :  { %v133_v37 = vpop.f32.mrf.mxu0 }
  0x9f   :  { %v134_v38 = vadd.f32 %v670_v35, %v133_v37 }
  0xa1   :  { %v147_v39 = vadd.f32 %v146_v26, %v134_v38 }
  0xa3   :  { %v150_v42 = vmax.f32 %v147_v39, 0.0 }
  0xa5   :  { %v167_v43 = vpack.c.bf16 %v150_v42, %v150_v42 }
  0xa6   :  { %v135_v44 = vpop.f32.mrf.mxu0 }
  0xa7   :  { %228 = vmatmul.bf16.vlgmr.msra.gmra.mxu2 %v167_v43 }
 0x12a   :  { %v229_v58 = vpop.f32.mrf.mxu2 }
 0x12b   :  { %v230_v59 = vadd.f32 %v671_v56, %v229_v58 }
 0x12d   :  { %v233_v61 = vmax.f32 %v230_v59, 0.0 }
 0x12f   :  { %v247_v62 = vpack.c.bf16 %v233_v61, %v233_v61 }
 0x131   :  { %575 = vmatmul.msk.bf16.vlgmr.msra.gmra.mxu3 %vm291_vm3, %v247_v62 }
 0x132   :  { %v231_v0 = vpop.f32.mrf.mxu2 }
 0x141   :  { %457 = vmatmul.bf16.vlgmr.msrb.gmra.mxu3 %v167_v43 }
 0x1b4   :  { %v308_v5 = vpop.f32.mrf.mxu3 }
 0x1b5   :  { %v309_v6 = vadd.f32 %v672_v4, %v308_v5 }
 0x1b7   :  { %v312_v7 = vmax.f32 %v309_v6, 0.0 }
 0x1b9   :  { %v342_v8 = vpack.c.bf16 %v312_v7, %v312_v7 }
 0x1bb   :  { %600 = vmatmul.msk.bf16.vlgmr.msrb.gmra.mxu1 %vm291_vm3, %v342_v8 }
 0x1bc   :  { %v310_v9 = vpop.f32.mrf.mxu3 }
 0x1c4   :  { %v458_v10 = vpop.f32.mrf.mxu3 }
 0x1cc   :  { %v460_v11 = vpop.f32.mrf.mxu3 }
 0x238   :  { %v397_v13 = vpop.f32.mrf.mxu1 }
 0x239   :  { %v459_v14 = vadd.f32 %v458_v10, %v397_v13 }
 0x23b   :  { %v466_v15 = vadd.f32 %v673_v12, %v459_v14 }
 0x23d   :  { %674 = vtanh.f32 %v466_v15 }
 0x240   :  { %v399_v16 = vpop.f32.mrf.mxu1 }
 0x243   :  { %v675_v17 = vpop.eup %674 }
 0x244   :  { %469 = vst.msk [vmem:[#allocation2] sm:$0xff] %vm468_vm4, %v675_v17 }
 0x245   :  { %480 = dma.vmem_to_hbm [thread:$0]  %s476_s0, 128, %s478_s28, [#allocation3]  }
 0x246   :  { %700 = dma.done.wait [#allocation3], 128  }
 0x247   :  { %701 = vsyncadd [#allocation3], 4294967168 }
 0x248   :  { %485 = vsyncpa [#allocation3], 1 }

</bundles_post_ra>
